<compile_context>
chip_gen: v7x
topology: tpu7x:2x2x1
jax: 0.10.0
libtpu: 0.0.40
codegen_flags: <defaults>
</compile_context>

<pallas_src>
import functools

import jax
import jax.numpy as jnp
from jax.experimental import pallas as pl
from jax.experimental.pallas import tpu as pltpu


def _round_up(x, m):
    return (x + m - 1) // m * m


# ----------------------------------------------------------------------------
# Tiling policy
# ----------------------------------------------------------------------------
_TM = 256                 # matmul row tile
_TN_CAP = 2048            # keep the whole N strip resident unless wider
_VMEM_LIMIT = 32 * 1024 * 1024


def _k_pad(K):
    # Small-K GEMMs use one full-K block (no padding to 128); large K is
    # padded to a 128 multiple and tiled with tk in {128, 256}.
    if K <= 256:
        return _round_up(K, 8)
    return _round_up(K, 128)


def _pick_tiles(M, K, N):
    tm = min(_TM, _round_up(M, 8))
    Mp = _round_up(M, tm)
    Kp = _k_pad(K)
    if Kp <= 256:
        tk = Kp
    else:
        tk = 256 if Kp % 256 == 0 else 128
    if N <= _TN_CAP:
        Np = _round_up(N, 8)
        tn = Np
    else:
        Np = _round_up(N, _TN_CAP)
        tn = _TN_CAP
    return tm, tk, tn, Mp, Kp, Np


def _row_tile(M, C):
    # ~512 KiB f32 blocks for elementwise / reduction kernels.
    tr = (131072 // max(C, 1)) // 8 * 8
    tr = max(8, min(512, tr))
    tr = min(tr, _round_up(M, 8))
    return tr, _round_up(M, tr)


# ----------------------------------------------------------------------------
# Pallas kernels
# ----------------------------------------------------------------------------
def _matmul_kernel(a_ref, b_ref, o_ref, *, relu):
    # bf16 x bf16 -> f32, accumulating directly into the resident output block.
    @pl.when(pl.program_id(2) == 0)
    def _init():
        o_ref[...] = jnp.zeros_like(o_ref)

    o_ref[...] += jnp.dot(a_ref[...], b_ref[...],
                          preferred_element_type=jnp.float32)

    if relu:
        @pl.when(pl.program_id(2) == pl.num_programs(2) - 1)
        def _epilogue():
            o_ref[...] = jnp.maximum(o_ref[...], 0.0)


def _bn_stats_kernel(x_ref, sum_ref, sq_ref):
    @pl.when(pl.program_id(0) == 0)
    def _init():
        sum_ref[...] = jnp.zeros_like(sum_ref)
        sq_ref[...] = jnp.zeros_like(sq_ref)

    x = x_ref[...]
    sum_ref[...] += jnp.sum(x, axis=0, keepdims=True)
    sq_ref[...] += jnp.sum(x * x, axis=0, keepdims=True)


def _bn_apply_kernel(x_ref, sc_ref, sh_ref, *rest, relu, with_res):
    if with_res:
        r_ref, o_ref = rest
    else:
        (o_ref,) = rest
    y = x_ref[...] * sc_ref[...] + sh_ref[...]
    if with_res:
        y = y + r_ref[...]
    if relu:
        y = jnp.maximum(y, 0.0)
    o_ref[...] = y


def _max3_kernel(a_ref, b_ref, c_ref, o_ref):
    o_ref[...] = jnp.maximum(jnp.maximum(a_ref[...], b_ref[...]), c_ref[...])


# ----------------------------------------------------------------------------
# Memoized pallas_call builders (one compiled kernel per unique shape/config)
# ----------------------------------------------------------------------------
@functools.lru_cache(maxsize=None)
def _matmul_call(Mp, Kp, Np, tm, tk, tn, relu):
    kern = functools.partial(_matmul_kernel, relu=relu)
    return pl.pallas_call(
        kern,
        out_shape=jax.ShapeDtypeStruct((Mp, Np), jnp.float32),
        grid=(Mp // tm, Np // tn, Kp // tk),
        in_specs=[
            pl.BlockSpec((tm, tk), lambda m, n, k: (m, k)),
            pl.BlockSpec((tk, tn), lambda m, n, k: (k, n)),
        ],
        out_specs=pl.BlockSpec((tm, tn), lambda m, n, k: (m, n)),
        compiler_params=pltpu.CompilerParams(
            dimension_semantics=("parallel", "parallel", "arbitrary"),
            vmem_limit_bytes=_VMEM_LIMIT),
    )


@functools.lru_cache(maxsize=None)
def _bn_stats_call(Mp, C, tr):
    return pl.pallas_call(
        _bn_stats_kernel,
        out_shape=(jax.ShapeDtypeStruct((1, C), jnp.float32),
                   jax.ShapeDtypeStruct((1, C), jnp.float32)),
        grid=(Mp // tr,),
        in_specs=[pl.BlockSpec((tr, C), lambda i: (i, 0))],
        out_specs=(pl.BlockSpec((1, C), lambda i: (0, 0)),
                   pl.BlockSpec((1, C), lambda i: (0, 0))),
        compiler_params=pltpu.CompilerParams(
            dimension_semantics=("arbitrary",)),
    )


@functools.lru_cache(maxsize=None)
def _bn_apply_call(Mp, C, tr, relu, with_res):
    kern = functools.partial(_bn_apply_kernel, relu=relu, with_res=with_res)
    in_specs = [pl.BlockSpec((tr, C), lambda i: (i, 0)),
                pl.BlockSpec((1, C), lambda i: (0, 0)),
                pl.BlockSpec((1, C), lambda i: (0, 0))]
    if with_res:
        in_specs.append(pl.BlockSpec((tr, C), lambda i: (i, 0)))
    return pl.pallas_call(
        kern,
        out_shape=jax.ShapeDtypeStruct((Mp, C), jnp.float32),
        grid=(Mp // tr,),
        in_specs=in_specs,
        out_specs=pl.BlockSpec((tr, C), lambda i: (i, 0)),
        compiler_params=pltpu.CompilerParams(
            dimension_semantics=("parallel",)),
    )


@functools.lru_cache(maxsize=None)
def _max3_call(Mp, C, tr):
    return pl.pallas_call(
        _max3_kernel,
        out_shape=jax.ShapeDtypeStruct((Mp, C), jnp.float32),
        grid=(Mp // tr,),
        in_specs=[pl.BlockSpec((tr, C), lambda i: (i, 0)) for _ in range(3)],
        out_specs=pl.BlockSpec((tr, C), lambda i: (i, 0)),
        compiler_params=pltpu.CompilerParams(
            dimension_semantics=("parallel",)),
    )


# ----------------------------------------------------------------------------
# Op wrappers (glue: padding / im2col / reshapes in plain JAX)
# ----------------------------------------------------------------------------
def matmul(a, b, relu=False):
    """(M, K) @ (K, N) -> (M, N) f32; inputs are cast to bf16 for the MXU."""
    M, K = a.shape
    K2, N = b.shape
    assert K == K2
    tm, tk, tn, Mp, Kp, Np = _pick_tiles(M, K, N)
    a = a.astype(jnp.bfloat16)
    b = b.astype(jnp.bfloat16)
    if (Mp, Kp) != (M, K):
        a = jnp.pad(a, ((0, Mp - M), (0, Kp - K)))
    if (Kp, Np) != (K, N):
        b = jnp.pad(b, ((0, Kp - K), (0, Np - N)))
    out = _matmul_call(Mp, Kp, Np, tm, tk, tn, relu)(a, b)
    if (Mp, Np) != (M, N):
        out = out[:M, :N]
    return out


def conv2d(x_nhwc, conv_p, stride=1, padding=0, dilation=1, relu=False):
    """PyTorch-semantics Conv2d (bias-free, as in this model)."""
    w = conv_p['wm']                      # (k*k*Cin, Cout) bf16, GEMM layout
    k, Cin, Cout = conv_p['k'], conv_p['cin'], conv_p['cout']
    N, H, W, _ = x_nhwc.shape
    xb = x_nhwc.astype(jnp.bfloat16)
    if k == 1 and padding == 0:
        Ho = (H - 1) // stride + 1
        Wo = (W - 1) // stride + 1
        if stride != 1:
            xb = xb[:, ::stride, ::stride, :]
        patches = xb.reshape(N * Ho * Wo, Cin)
        if _k_pad(Cin) != Cin:
            patches = jnp.pad(patches, ((0, 0), (0, _k_pad(Cin) - Cin)))
    else:
        xp = jnp.pad(xb, ((0, 0), (padding, padding), (padding, padding), (0, 0)))
        Ho = (H + 2 * padding - dilation * (k - 1) - 1) // stride + 1
        Wo = (W + 2 * padding - dilation * (k - 1) - 1) // stride + 1
        cols = []
        for i in range(k):
            for j in range(k):
                cols.append(
                    xp[:, i * dilation:i * dilation + stride * (Ho - 1) + 1:stride,
                          j * dilation:j * dilation + stride * (Wo - 1) + 1:stride, :])
        K = k * k * Cin
        Kp = _k_pad(K)
        if Kp > K:                         # append zero columns inside the concat
            cols.append(jnp.zeros((N, Ho, Wo, Kp - K), jnp.bfloat16))
        patches = jnp.concatenate(cols, axis=-1).reshape(N * Ho * Wo, Kp)
    if patches.shape[1] != w.shape[0]:
        w = jnp.pad(w, ((0, patches.shape[1] - w.shape[0]), (0, 0)))
    out = matmul(patches, w, relu=relu)
    return out.reshape(N, Ho, Wo, Cout)


def batchnorm2d(x_nhwc, bn_p, relu=False, residual=None, eps=1e-5):
    """Training-mode BatchNorm2d (batch stats), optional fused residual+ReLU."""
    N, H, W, C = x_nhwc.shape
    M = N * H * W
    tr, Mp = _row_tile(M, C)
    x2 = x_nhwc.reshape(M, C)
    xpad = jnp.pad(x2, ((0, Mp - M), (0, 0))) if Mp != M else x2

    s, sq = _bn_stats_call(Mp, C, tr)(xpad)
    mean = s[0] / M
    var = jnp.maximum(sq[0] / M - mean * mean, 0.0)      # clamp: no NaN from cancellation
    inv = jax.lax.rsqrt(var + eps)
    scale = (bn_p['g'] * inv).reshape(1, C)
    shift = (bn_p['b'] - mean * bn_p['g'] * inv).reshape(1, C)

    if residual is None:
        out = _bn_apply_call(Mp, C, tr, relu, False)(xpad, scale, shift)
    else:
        r2 = residual.reshape(M, C)
        rpad = jnp.pad(r2, ((0, Mp - M), (0, 0))) if Mp != M else r2
        out = _bn_apply_call(Mp, C, tr, relu, True)(xpad, scale, shift, rpad)
    if Mp != M:
        out = out[:M]
    return out.reshape(N, H, W, C)


def maxpool2d(x_nhwc, k=3, stride=2, padding=1):
    N, H, W, C = x_nhwc.shape
    xp = jnp.pad(x_nhwc, ((0, 0), (padding, padding), (padding, padding), (0, 0)),
                 constant_values=-jnp.inf)
    Hp, Wp = H + 2 * padding, W + 2 * padding
    Ho = (Hp - k) // stride + 1
    Wo = (Wp - k) // stride + 1
    # W-direction window max (elementwise, no (k*k, M, C) stack).
    ew = stride * (Wo - 1) + 1
    cm = xp[:, :, 0:ew:stride, :]
    for j in range(1, k):
        cm = jnp.maximum(cm, xp[:, :, j:ew + j:stride, :])   # (N, Hp, Wo, C)
    # H-direction 3-tap max in a row-tiled Pallas kernel.
    eh = stride * (Ho - 1) + 1
    M = N * Ho * Wo
    tr, Mp = _row_tile(M, C)
    rows = []
    for i in range(k):
        r = cm[:, i:eh + i:stride, :, :].reshape(M, C)
        if Mp != M:
            r = jnp.pad(r, ((0, Mp - M), (0, 0)))
        rows.append(r)
    out = _max3_call(Mp, C, tr)(*rows)
    if Mp != M:
        out = out[:M]
    return out.reshape(N, Ho, Wo, C)


def _interp_matrix(out_size, in_size):
    # bilinear, align_corners=True
    if out_size == 1:
        src = jnp.zeros((1,), jnp.float32)
    else:
        src = jnp.arange(out_size, dtype=jnp.float32) * (in_size - 1) / (out_size - 1)
    p0 = jnp.clip(jnp.floor(src).astype(jnp.int32), 0, in_size - 1)
    p1 = jnp.clip(p0 + 1, 0, in_size - 1)
    w1 = src - p0.astype(jnp.float32)
    w0 = 1.0 - w1
    return (jax.nn.one_hot(p0, in_size, dtype=jnp.float32) * w0[:, None]
            + jax.nn.one_hot(p1, in_size, dtype=jnp.float32) * w1[:, None])


def bilinear_upsample_align_corners(feat_nhwc, out_h, out_w):
    """Returns NCHW output (matches F.interpolate(..., align_corners=True))."""
    # TODO(synk): a 2-tap gather+lerp kernel would avoid the one-hot GEMM waste.
    N, Hin, Win, C = feat_nhwc.shape
    A = _interp_matrix(out_h, Hin)
    B = _interp_matrix(out_w, Win)
    t = jnp.transpose(feat_nhwc, (1, 0, 2, 3)).reshape(Hin, N * Win * C)
    t = matmul(A, t)                                   # (out_h, N*Win*C)
    t = t.reshape(out_h, N, Win, C)
    t = jnp.transpose(t, (2, 1, 0, 3)).reshape(Win, N * out_h * C)
    t = matmul(B, t)                                   # (out_w, N*out_h*C)
    t = t.reshape(out_w, N, out_h, C)
    return jnp.transpose(t, (1, 3, 2, 0))              # (N, C, out_h, out_w)


def dropout2d(x_nhwc, p, key):
    # TODO(synk): training-mode Dropout2d with a jax.random stream (PyTorch's
    # RNG sequence cannot be reproduced); whole channels dropped per sample.
    N, _, _, C = x_nhwc.shape
    keep = jax.random.bernoulli(key, 1.0 - p, (N, 1, 1, C)).astype(x_nhwc.dtype)
    return x_nhwc * keep * (1.0 / (1.0 - p))


# ----------------------------------------------------------------------------
# Parameter construction (deterministic)
# ----------------------------------------------------------------------------
class _KeyGen:
    def __init__(self, seed):
        self._key = jax.random.PRNGKey(seed)
        self._i = 0

    def __call__(self):
        self._i += 1
        return jax.random.fold_in(self._key, self._i)


def _conv_params(key, cout, cin, k, std=None):
    if std is None:
        std = (2.0 / (cin * k * k)) ** 0.5
    w = jax.random.normal(key, (cout, cin, k, k), jnp.float32) * std  # OIHW
    wm = jnp.transpose(w, (2, 3, 1, 0)).reshape(k * k * cin, cout)    # GEMM layout
    return {'wm': wm.astype(jnp.bfloat16), 'k': k, 'cin': cin, 'cout': cout}


def _bn_params(c):
    return {'g': jnp.ones((c,), jnp.float32), 'b': jnp.zeros((c,), jnp.float32)}


def _bottleneck_params(kg, inplanes, planes, has_down):
    p = {
        'conv1': _conv_params(kg(), planes, inplanes, 1),   'bn1': _bn_params(planes),
        'conv2': _conv_params(kg(), planes, planes, 3),     'bn2': _bn_params(planes),
        'conv3': _conv_params(kg(), planes * 4, planes, 1), 'bn3': _bn_params(planes * 4),
    }
    if has_down:
        p['down_conv'] = _conv_params(kg(), planes * 4, inplanes, 1)
        p['down_bn'] = _bn_params(planes * 4)
    return p


def init_params(seed=0):
    kg = _KeyGen(seed)
    params = {'layer0': {
        'conv1': _conv_params(kg(), 64, 3, 3),   'bn1': _bn_params(64),
        'conv2': _conv_params(kg(), 64, 64, 3),  'bn2': _bn_params(64),
        'conv3': _conv_params(kg(), 128, 64, 3), 'bn3': _bn_params(128),
    }}
    inplanes = 128
    for name, planes, nblocks in [('layer1', 64, 3), ('layer2', 128, 4),
                                  ('layer3', 256, 6), ('layer4', 512, 3)]:
        blocks = []
        for b in range(nblocks):
            blocks.append(_bottleneck_params(
                kg, inplanes if b == 0 else planes * 4, planes, has_down=(b == 0)))
        params[name] = blocks
        inplanes = planes * 4
    # down_query: Conv2d(2048+1024+512 -> 256, 1x1, bias=False) + ReLU + Dropout2d
    params['down_query'] = _conv_params(kg(), 256, 2048 + 1024 + 512, 1, std=0.02)
    return params


# ----------------------------------------------------------------------------
# Model forward
# ----------------------------------------------------------------------------
def _bottleneck_fwd(p, x, dilation):
    # encoder_fuse3 forces stride=1 everywhere (conv2 and downsample).
    out = conv2d(x, p['conv1'])
    out = batchnorm2d(out, p['bn1'], relu=True)
    out = conv2d(out, p['conv2'], stride=1, padding=dilation, dilation=dilation)
    out = batchnorm2d(out, p['bn2'], relu=True)
    out = conv2d(out, p['conv3'])
    if 'down_conv' in p:
        idn = conv2d(x, p['down_conv'])
        idn = batchnorm2d(idn, p['down_bn'], relu=False)
    else:
        idn = x
    # bn3 + residual add + ReLU fused in one Pallas pass.
    return batchnorm2d(out, p['bn3'], relu=True, residual=idn)


def _run_layer(blocks, x, dilation):
    for p in blocks:
        x = _bottleneck_fwd(p, x, dilation)
    return x


def encoder_fuse3_forward(params, x_nchw, dropout_key):
    n, c, h, w = x_nchw.shape
    x = jnp.transpose(x_nchw, (0, 2, 3, 1)).astype(jnp.float32)   # -> NHWC

    # layer0 (deep-stem: conv/bn/relu x3 + maxpool)
    p0 = params['layer0']
    x = conv2d(x, p0['conv1'], stride=2, padding=1)
    x = batchnorm2d(x, p0['bn1'], relu=True)
    x = conv2d(x, p0['conv2'], stride=1, padding=1)
    x = batchnorm2d(x, p0['bn2'], relu=True)
    x = conv2d(x, p0['conv3'], stride=1, padding=1)
    x = batchnorm2d(x, p0['bn3'], relu=True)
    feat_0 = maxpool2d(x, k=3, stride=2, padding=1)

    # layer2/3 dilated by 2, layer4 by 4, all strides 1 (per the module's
    # named_modules() edits), so feat_2/3/4 share the feat_1 spatial size.
    feat_1 = _run_layer(params['layer1'], feat_0, dilation=1)
    feat_2 = _run_layer(params['layer2'], feat_1, dilation=2)
    feat_3 = _run_layer(params['layer3'], feat_2, dilation=2)
    feat_4 = _run_layer(params['layer4'], feat_3, dilation=4)

    feat = jnp.concatenate([feat_4, feat_3, feat_2], axis=-1)     # 3584 channels
    # down_query: 1x1 conv (bias-free) with fused ReLU epilogue, then Dropout2d.
    q = conv2d(feat, params['down_query'], relu=True)             # -> 256 channels
    q = dropout2d(q, 0.5, dropout_key)
    out = bilinear_upsample_align_corners(q, h, w)                # NCHW (n, 256, h, w)
    return out


# ----------------------------------------------------------------------------
if __name__ == "__main__":
    key = jax.random.PRNGKey(0)
    # Small RGB image batch consistent with the module (NCHW).
    x = jax.random.normal(key, (2, 3, 32, 32), jnp.float32)
    params = init_params(seed=0)
    out = encoder_fuse3_forward(params, x, jax.random.fold_in(key, 123))
    out = jax.block_until_ready(out)
    assert out.shape == (2, 256, 32, 32), out.shape   # (N, reduce_dim=256, H, W)
    assert bool(jnp.all(jnp.isfinite(out)))
    print("KERNEL_OK")
</pallas_src>

<mosaic_0001>
module attributes {stable_mosaic.version = 11 : i64} {
  func.func @_matmul_kernel(%arg0: i32, %arg1: i32, %arg2: i32, %arg3: memref<256x32xbf16, #tpu.memory_space<vmem>>, %arg4: memref<32x64xbf16, #tpu.memory_space<vmem>>, %arg5: memref<256x64xf32, #tpu.memory_space<vmem>>) attributes {dimension_semantics = [#tpu.dimension_semantics<parallel>, #tpu.dimension_semantics<parallel>, #tpu.dimension_semantics<arbitrary>], iteration_bounds = array<i64: 2, 1, 1>, scalar_prefetch = 0 : i64, scratch_operands = 0 : i64, tpu.core_type = #tpu.core_type<tc>, window_params = [{transform_indices = @transform_0, window_bounds = array<i64: 256, 32>}, {transform_indices = @transform_1, window_bounds = array<i64: 32, 64>}, {transform_indices = @transform_2, window_bounds = array<i64: 256, 64>}]} {
    %c0_i32 = arith.constant 0 : i32
    %0 = arith.cmpi eq, %arg2, %c0_i32 : i32
    %1 = arith.extui %0 : i1 to i32
    %c0_i32_0 = arith.constant 0 : i32
    %2 = arith.cmpi ne, %1, %c0_i32_0 : i32
    scf.if %2 {
      %cst_8 = arith.constant 0.000000e+00 : f32
      %9 = vector.broadcast %cst_8 : f32 to vector<256x64xf32>
      %c0_9 = arith.constant 0 : index
      %c0_10 = arith.constant 0 : index
      %10 = vector.load %arg5[%c0_9, %c0_10] : memref<256x64xf32, #tpu.memory_space<vmem>>, vector<256x64xf32>
      tpu.vector_store %arg5[%c0_9, %c0_10], %9 {strides = array<i32>} : memref<256x64xf32, #tpu.memory_space<vmem>>, vector<256x64xf32>,
    } else {
    }
    %c0 = arith.constant 0 : index
    %c0_1 = arith.constant 0 : index
    %3 = vector.load %arg5[%c0, %c0_1] : memref<256x64xf32, #tpu.memory_space<vmem>>, vector<256x64xf32>
    %c0_2 = arith.constant 0 : index
    %c0_3 = arith.constant 0 : index
    %4 = vector.load %arg3[%c0_2, %c0_3] : memref<256x32xbf16, #tpu.memory_space<vmem>>, vector<256x32xbf16>
    %c0_4 = arith.constant 0 : index
    %c0_5 = arith.constant 0 : index
    %5 = vector.load %arg4[%c0_4, %c0_5] : memref<32x64xbf16, #tpu.memory_space<vmem>>, vector<32x64xbf16>
    %cst = arith.constant dense<0.000000e+00> : vector<256x64xf32>
    %6 = tpu.matmul %4, %5, %cst {dimension_numbers = #tpu.dot_dimension_numbers<[1], [0], [0], [1], [0, 0, 1, 1], [], []>} : vector<256x32xbf16>, vector<32x64xbf16>, vector<256x64xf32> -> vector<256x64xf32>
    %7 = arith.addf %3, %6 : vector<256x64xf32>
    %c0_6 = arith.constant 0 : index
    %c0_7 = arith.constant 0 : index
    %8 = vector.load %arg5[%c0_6, %c0_7] : memref<256x64xf32, #tpu.memory_space<vmem>>, vector<256x64xf32>
    tpu.vector_store %arg5[%c0_6, %c0_7], %7 {strides = array<i32>} : memref<256x64xf32, #tpu.memory_space<vmem>>, vector<256x64xf32>,
    return
  }
  func.func @transform_0(%arg0: i32, %arg1: i32, %arg2: i32) -> (i32, i32) {
    %c0_i32 = arith.constant 0 : i32
    return %arg0, %arg2 : i32, i32
  }
  func.func @transform_1(%arg0: i32, %arg1: i32, %arg2: i32) -> (i32, i32) {
    %c0_i32 = arith.constant 0 : i32
    return %arg2, %arg1 : i32, i32
  }
  func.func @transform_2(%arg0: i32, %arg1: i32, %arg2: i32) -> (i32, i32) {
    %c0_i32 = arith.constant 0 : i32
    return %arg0, %arg1 : i32, i32
  }
}

</mosaic_0001>

<bundles_post_ra>
// kernel: tpu_custom_call.1
= control target key start
LH: loop header
LB: loop body
LE: loop exit
PB: predicated region body
PF: predicated region fallthrough
CT: control target
= control target key end

     0   :  { %s977_s9 = smov 0   ;;  %s979_s10 = smov 0   ;;  %s1212_s0 = inlined_call_operand.vmem [shape: bf16[512,32], index: 0, kind: input, shape index: {}]   ;;  %s1213_s1 = inlined_call_operand.vmem [shape: bf16[32,64], index: 1, kind: input, shape index: {}]   ;;  %s1214_s2 = inlined_call_operand.vmem [shape: f32[512,64], index: 2, kind: output, shape index: {}]  }
   0x1   :  { %s981_s11 = smov 0  }
   0x2 LB: > { %s31_s12 = sadd.s32 1, %s955_s10  ;;  %p795_p0 = scmp.ge.s32.totalorder %s959_s11, 1  ;;  %s959_s11 = sphi %s981_s11, %s12_s11   ;;  %s955_s10 = sphi %s979_s10, %s1216_s10   ;;  %s951_s9 = sphi %s977_s9, %s1215_s9  }
   0x3   : > { %p33_p1 = scmp.ge.s32.totalorder %s31_s12, 2  ;;  %p155_p2 = scmp.lt.s32.totalorder %s959_s11, 3 }
   0x5   : > { %s1218_s12 = smov (%p33_p1, %s31_s12), 0  ;;  %p156_p3 = pnand %p795_p0, %p155_p2 }
   0x6   : > { %v919_v0 = vld [vmem:[%s1213_s1] sm:$0xff] (!%p156_p3)   ;;  %s796_s15 = sshll.u32 (!%p156_p3), %s951_s9, 5  ;;  %v920_v1 = vld [vmem:[%s1213_s1 + $0x8] sm:$0xff] (!%p156_p3)   ;;  %vm223_vm0 = vcmask (!%p156_p3), 523264   ;;  %vm416_vm1 = vcmask (!%p156_p3), 261120   ;;  %v961_v3 = vmov (!%p156_p3), 0.0  }
   0x7   : > { %159 = sbr.rel (%p156_p3) target bundleno = 262 (0x106), region = 28  ;;  %p192_p4 = scmp.lt.s32.totalorder (!%p156_p3), %s796_s15, 63  ;;  %854 = vmatprep.subr.bf16.mxu0 (!%p156_p3), %v919_v0  ;;  %890 = vmatprep.subr.bf16.mxu1 (!%p156_p3), %v919_v0 }
   0x8   : > { %855 = vmatpush3.bf16.msra.mxu0 (!%p156_p3), %v919_v0  ;;  %892 = vmatpush3.bf16.msra.mxu1 (!%p156_p3), %v919_v0 }
   0x9   : > { %856 = vmatprep.subr.bf16.mxu0 (!%p156_p3), %v920_v1  ;;  %891 = vmatprep.subr.bf16.mxu1 (!%p156_p3), %v920_v1 }
   0xc   : > { %857 = vmatpush3.bf16.msra.mxu0 (!%p156_p3), %v920_v1  ;;  %893 = vmatpush3.bf16.msra.mxu1 (!%p156_p3), %v920_v1 }
   0xe   : > { %s1220_s15 = smov (!%p192_p4, %s796_s15), 63 }
   0xf   : > { %s797_s18 = sshll.u32 %s1220_s15, 2  ;;  %s799_s19 = sshll.u32 %s1220_s15, 3 }
  0x10   : > { %s1004_s22 = scalar_lea.vmem %s1212_s0, %s797_s18  ;;  %s1009_s25 = scalar_lea.vmem %s1214_s2, %s799_s19 }
  0x11   : > { %v921_v2 = vld [vmem:[%s1004_s22] sm:$0xff]   ;;  %226 = vst.msk [vmem:[%s1009_s25 + $0x10] sm:$0xff] %vm223_vm0, %v961_v3  ;;  %224 = vst.msk [vmem:[%s1009_s25] sm:$0xff] %vm223_vm0, %v961_v3  ;;  %v923_v5 = vld [vmem:[%s1004_s22 + $0x8] sm:$0xff]  }
  0x12   : > { %225 = vst.msk [vmem:[%s1009_s25 + $0x8] sm:$0xff] %vm223_vm0, %v961_v3  ;;  %227 = vst.msk [vmem:[%s1009_s25 + $0x18] sm:$0xff] %vm223_vm0, %v961_v3  ;;  %v922_v4 = vld [vmem:[%s1004_s22 + $0x40] sm:$0xff]   ;;  %858 = vmatprep.mubr.msk.bf16.mxu0 %vm416_vm1, %v921_v2  ;;  %v924_v6 = vld [vmem:[%s1004_s22 + $0x48] sm:$0xff]  }
  0x13   : > { %228 = vst.msk [vmem:[%s1009_s25 + $0x20] sm:$0xff] %vm223_vm0, %v961_v3  ;;  %229 = vst.msk [vmem:[%s1009_s25 + $0x28] sm:$0xff] %vm223_vm0, %v961_v3  ;;  %874 = vmatprep.mubr.msk.bf16.mxu1 %vm416_vm1, %v922_v4  ;;  %859 = vmatmul.mubr.msk.bf16.vlgmr.msra.gmra.mrb[0].mxu0 %vm416_vm1, %v923_v5  ;;  %v925_v7 = vld [vmem:[%s1004_s22 + $0x10] sm:$0xff]   ;;  %v927_v9 = vld [vmem:[%s1004_s22 + $0x18] sm:$0xff]  }
  0x14   : > { %230 = vst.msk [vmem:[%s1009_s25 + $0x30] sm:$0xff] %vm223_vm0, %v961_v3  ;;  %231 = vst.msk [vmem:[%s1009_s25 + $0x38] sm:$0xff] %vm223_vm0, %v961_v3  ;;  %875 = vmatmul.mubr.msk.bf16.vlgmr.msra.gmra.mrb[0].mxu1 %vm416_vm1, %v924_v6  ;;  %v926_v8 = vld [vmem:[%s1004_s22 + $0x50] sm:$0xff]   ;;  %862 = vmatprep.mubr.msk.bf16.mxu0 %vm416_vm1, %v925_v7  ;;  %v928_v10 = vld [vmem:[%s1004_s22 + $0x58] sm:$0xff]  }
  0x15   : > { %232 = vst.msk [vmem:[%s1009_s25 + $0x40] sm:$0xff] %vm223_vm0, %v961_v3  ;;  %233 = vst.msk [vmem:[%s1009_s25 + $0x48] sm:$0xff] %vm223_vm0, %v961_v3  ;;  %878 = vmatprep.mubr.msk.bf16.mxu1 %vm416_vm1, %v926_v8  ;;  %v929_v11 = vld [vmem:[%s1004_s22 + $0x20] sm:$0xff]   ;;  %v931_v13 = vld [vmem:[%s1004_s22 + $0x28] sm:$0xff]  }
  0x16   : > { %234 = vst.msk [vmem:[%s1009_s25 + $0x50] sm:$0xff] %vm223_vm0, %v961_v3  ;;  %235 = vst.msk [vmem:[%s1009_s25 + $0x58] sm:$0xff] %vm223_vm0, %v961_v3  ;;  %v930_v12 = vld [vmem:[%s1004_s22 + $0x60] sm:$0xff]   ;;  %v932_v14 = vld [vmem:[%s1004_s22 + $0x68] sm:$0xff]  }
  0x17   : > { %236 = vst.msk [vmem:[%s1009_s25 + $0x60] sm:$0xff] %vm223_vm0, %v961_v3  ;;  %237 = vst.msk [vmem:[%s1009_s25 + $0x68] sm:$0xff] %vm223_vm0, %v961_v3  ;;  %v933_v15 = vld [vmem:[%s1004_s22 + $0x30] sm:$0xff]   ;;  %v935_v17 = vld [vmem:[%s1004_s22 + $0x38] sm:$0xff]  }
  0x18   : > { %238 = vst.msk [vmem:[%s1009_s25 + $0x70] sm:$0xff] %vm223_vm0, %v961_v3  ;;  %239 = vst.msk [vmem:[%s1009_s25 + $0x78] sm:$0xff] %vm223_vm0, %v961_v3  ;;  %v934_v16 = vld [vmem:[%s1004_s22 + $0x70] sm:$0xff]   ;;  %v936_v18 = vld [vmem:[%s1004_s22 + $0x78] sm:$0xff]  }
  0x19   : > { %240 = vst.msk [vmem:[%s1009_s25 + $0x80] sm:$0xff] %vm223_vm0, %v961_v3  ;;  %241 = vst.msk [vmem:[%s1009_s25 + $0x88] sm:$0xff] %vm223_vm0, %v961_v3  ;;  %v258_v19 = vld [vmem:[%s1009_s25 + $0x10] sm:$0xff]  ;;  %v256_v21 = vld [vmem:[%s1009_s25] sm:$0xff] }
  0x1a   : > { %242 = vst.msk [vmem:[%s1009_s25 + $0x90] sm:$0xff] %vm223_vm0, %v961_v3  ;;  %243 = vst.msk [vmem:[%s1009_s25 + $0x98] sm:$0xff] %vm223_vm0, %v961_v3  ;;  %v259_v24 = vld [vmem:[%s1009_s25 + $0x18] sm:$0xff]  ;;  %v257_v29 = vld [vmem:[%s1009_s25 + $0x8] sm:$0xff] }
  0x1b   : > { %244 = vst.msk [vmem:[%s1009_s25 + $0xa0] sm:$0xff] %vm223_vm0, %v961_v3  ;;  %245 = vst.msk [vmem:[%s1009_s25 + $0xa8] sm:$0xff] %vm223_vm0, %v961_v3  ;;  %863 = vmatmul.mubr.msk.bf16.gmra.mrb[4].mxu0 %vm416_vm1, %v927_v9  ;;  %v262_v43 = vld [vmem:[%s1009_s25 + $0x30] sm:$0xff]  ;;  %v260_v45 = vld [vmem:[%s1009_s25 + $0x20] sm:$0xff] }
  0x1c   : > { %246 = vst.msk [vmem:[%s1009_s25 + $0xb0] sm:$0xff] %vm223_vm0, %v961_v3  ;;  %247 = vst.msk [vmem:[%s1009_s25 + $0xb8] sm:$0xff] %vm223_vm0, %v961_v3  ;;  %879 = vmatmul.mubr.msk.bf16.gmra.mrb[4].mxu1 %vm416_vm1, %v928_v10  ;;  %866 = vmatprep.mubr.msk.bf16.mxu0 %vm416_vm1, %v929_v11  ;;  %v263_v48 = vld [vmem:[%s1009_s25 + $0x38] sm:$0xff]  ;;  %v261_v53 = vld [vmem:[%s1009_s25 + $0x28] sm:$0xff] }
  0x1d   : > { %248 = vst.msk [vmem:[%s1009_s25 + $0xc0] sm:$0xff] %vm223_vm0, %v961_v3  ;;  %249 = vst.msk [vmem:[%s1009_s25 + $0xc8] sm:$0xff] %vm223_vm0, %v961_v3  ;;  %882 = vmatprep.mubr.msk.bf16.mxu1 %vm416_vm1, %v930_v12  ;;  %v264_v5 = vld [vmem:[%s1009_s25 + $0x40] sm:$0xff]  ;;  %v267_v8 = vld [vmem:[%s1009_s25 + $0x58] sm:$0xff] }
  0x1e   : > { %250 = vst.msk [vmem:[%s1009_s25 + $0xd0] sm:$0xff] %vm223_vm0, %v961_v3  ;;  %251 = vst.msk [vmem:[%s1009_s25 + $0xd8] sm:$0xff] %vm223_vm0, %v961_v3 }
  0x1f   : > { %252 = vst.msk [vmem:[%s1009_s25 + $0xe0] sm:$0xff] %vm223_vm0, %v961_v3  ;;  %253 = vst.msk [vmem:[%s1009_s25 + $0xe8] sm:$0xff] %vm223_vm0, %v961_v3 }
  0x20   : > { %254 = vst.msk [vmem:[%s1009_s25 + $0xf0] sm:$0xff] %vm223_vm0, %v961_v3  ;;  %255 = vst.msk [vmem:[%s1009_s25 + $0xf8] sm:$0xff] %vm223_vm0, %v961_v3  ;;  %v272_v23 = vld [vmem:[%s1009_s25 + $0x80] sm:$0xff]  ;;  %v273_v34 = vld [vmem:[%s1009_s25 + $0x88] sm:$0xff] }
  0x21   : > { %v274_v20 = vld [vmem:[%s1009_s25 + $0x90] sm:$0xff]  ;;  %v275_v28 = vld [vmem:[%s1009_s25 + $0x98] sm:$0xff] }
  0x22   : > { %v276_v47 = vld [vmem:[%s1009_s25 + $0xa0] sm:$0xff]  ;;  %v277_v58 = vld [vmem:[%s1009_s25 + $0xa8] sm:$0xff]  ;;  %v266_v3 = vld [vmem:[%s1009_s25 + $0x50] sm:$0xff] }
  0x23   : > { %867 = vmatmul.mubr.msk.bf16.gmra.mrb[8].mxu0 %vm416_vm1, %v931_v13  ;;  %v278_v44 = vld [vmem:[%s1009_s25 + $0xb0] sm:$0xff]  ;;  %v279_v52 = vld [vmem:[%s1009_s25 + $0xb8] sm:$0xff]  ;;  %v265_v13 = vld [vmem:[%s1009_s25 + $0x48] sm:$0xff] }
  0x24   : > { %883 = vmatmul.mubr.msk.bf16.gmra.mrb[8].mxu1 %vm416_vm1, %v932_v14  ;;  %870 = vmatprep.mubr.msk.bf16.mxu0 %vm416_vm1, %v933_v15  ;;  %v280_v7 = vld [vmem:[%s1009_s25 + $0xc0] sm:$0xff] }
  0x25   : > { %886 = vmatprep.mubr.msk.bf16.mxu1 %vm416_vm1, %v934_v16  ;;  %v282_v4 = vld [vmem:[%s1009_s25 + $0xd0] sm:$0xff]  ;;  %v283_v12 = vld [vmem:[%s1009_s25 + $0xd8] sm:$0xff] }
  0x2b   : > { %871 = vmatmul.mubr.msk.bf16.gmra.mrb[12].mxu0 %vm416_vm1, %v935_v17 }
  0x2c   : > { %887 = vmatmul.mubr.msk.bf16.gmra.mrb[12].mxu1 %vm416_vm1, %v936_v18  ;;  %v281_v18 = vld [vmem:[%s1009_s25 + $0xc8] sm:$0xff] }
  0xe6   : > { %v860_v22 = vpop.f32.mrb[0].mxu0 }
  0xe7   : > { %v628_v25 = vadd.f32 %v860_v22, %v258_v19  ;;  %v876_v26 = vpop.f32.mrb[0].mxu1  ;;  %v499_v27 = vpop.f32.mrb[1].mxu0 }
  0xe8   : > { %v644_v30 = vadd.f32 %v876_v26, %v274_v20  ;;  %v626_v31 = vadd.f32 %v499_v27, %v256_v21  ;;  %v563_v32 = vpop.f32.mrb[1].mxu1  ;;  %v861_v33 = vpop.f32.mrb[2].mxu0  ;;  %v270_v27 = vld [vmem:[%s1009_s25 + $0x70] sm:$0xff] }
  0xe9   : > { %661 = vst.msk [vmem:[%s1009_s25 + $0x10] sm:$0xff] %vm223_vm0, %v628_v25  ;;  %v642_v35 = vadd.f32 %v563_v32, %v272_v23  ;;  %v629_v36 = vadd.f32 %v861_v33, %v259_v24  ;;  %v877_v37 = vpop.f32.mrb[2].mxu1  ;;  %v502_v38 = vpop.f32.mrb[3].mxu0  ;;  %v271_v32 = vld [vmem:[%s1009_s25 + $0x78] sm:$0xff] }
  0xea   : > { %677 = vst.msk [vmem:[%s1009_s25 + $0x90] sm:$0xff] %vm223_vm0, %v644_v30  ;;  %659 = vst.msk [vmem:[%s1009_s25] sm:$0xff] %vm223_vm0, %v626_v31  ;;  %v645_v39 = vadd.f32 %v877_v37, %v275_v28  ;;  %v627_v40 = vadd.f32 %v502_v38, %v257_v29  ;;  %v566_v41 = vpop.f32.mrb[3].mxu1  ;;  %v286_v28 = vld [vmem:[%s1009_s25 + $0xf0] sm:$0xff]  ;;  %v268_v29 = vld [vmem:[%s1009_s25 + $0x60] sm:$0xff] }
  0xeb   : > { %675 = vst.msk [vmem:[%s1009_s25 + $0x80] sm:$0xff] %vm223_vm0, %v642_v35  ;;  %662 = vst.msk [vmem:[%s1009_s25 + $0x18] sm:$0xff] %vm223_vm0, %v629_v36  ;;  %v643_v42 = vadd.f32 %v566_v41, %v273_v34  ;;  %v284_v31 = vld [vmem:[%s1009_s25 + $0xe0] sm:$0xff]  ;;  %v287_v36 = vld [vmem:[%s1009_s25 + $0xf8] sm:$0xff] }
  0xec   : > { %678 = vst.msk [vmem:[%s1009_s25 + $0x98] sm:$0xff] %vm223_vm0, %v645_v39  ;;  %660 = vst.msk [vmem:[%s1009_s25 + $0x8] sm:$0xff] %vm223_vm0, %v627_v40  ;;  %v269_v37 = vld [vmem:[%s1009_s25 + $0x68] sm:$0xff] }
  0xed   : > { %676 = vst.msk [vmem:[%s1009_s25 + $0x88] sm:$0xff] %vm223_vm0, %v643_v42  ;;  %v285_v42 = vld [vmem:[%s1009_s25 + $0xe8] sm:$0xff] }
  0xee   : > { %v864_v46 = vpop.f32.mrb[4].mxu0 }
  0xef   : > { %v632_v49 = vadd.f32 %v864_v46, %v262_v43  ;;  %v880_v50 = vpop.f32.mrb[4].mxu1  ;;  %v515_v51 = vpop.f32.mrb[5].mxu0 }
  0xf0   : > { %v648_v54 = vadd.f32 %v880_v50, %v278_v44  ;;  %v630_v55 = vadd.f32 %v515_v51, %v260_v45  ;;  %v579_v56 = vpop.f32.mrb[5].mxu1  ;;  %v865_v57 = vpop.f32.mrb[6].mxu0 }
  0xf1   : > { %665 = vst.msk [vmem:[%s1009_s25 + $0x30] sm:$0xff] %vm223_vm0, %v632_v49  ;;  %v646_v59 = vadd.f32 %v579_v56, %v276_v47  ;;  %v633_v60 = vadd.f32 %v865_v57, %v263_v48  ;;  %v881_v61 = vpop.f32.mrb[6].mxu1  ;;  %v518_v62 = vpop.f32.mrb[7].mxu0 }
  0xf2   : > { %681 = vst.msk [vmem:[%s1009_s25 + $0xb0] sm:$0xff] %vm223_vm0, %v648_v54  ;;  %663 = vst.msk [vmem:[%s1009_s25 + $0x20] sm:$0xff] %vm223_vm0, %v630_v55  ;;  %v649_v63 = vadd.f32 %v881_v61, %v279_v52  ;;  %v631_v0 = vadd.f32 %v518_v62, %v261_v53  ;;  %v582_v1 = vpop.f32.mrb[7].mxu1 }
  0xf3   : > { %679 = vst.msk [vmem:[%s1009_s25 + $0xa0] sm:$0xff] %vm223_vm0, %v646_v59  ;;  %666 = vst.msk [vmem:[%s1009_s25 + $0x38] sm:$0xff] %vm223_vm0, %v633_v60  ;;  %v647_v2 = vadd.f32 %v582_v1, %v277_v58 }
  0xf4   : > { %682 = vst.msk [vmem:[%s1009_s25 + $0xb8] sm:$0xff] %vm223_vm0, %v649_v63  ;;  %664 = vst.msk [vmem:[%s1009_s25 + $0x28] sm:$0xff] %vm223_vm0, %v631_v0 }
  0xf5   : > { %680 = vst.msk [vmem:[%s1009_s25 + $0xa8] sm:$0xff] %vm223_vm0, %v647_v2 }
  0xf6   : > { %v868_v6 = vpop.f32.mrb[8].mxu0 }
  0xf7   : > { %v636_v9 = vadd.f32 %v868_v6, %v266_v3  ;;  %v884_v10 = vpop.f32.mrb[8].mxu1  ;;  %v531_v11 = vpop.f32.mrb[9].mxu0 }
  0xf8   : > { %v652_v14 = vadd.f32 %v884_v10, %v282_v4  ;;  %v634_v15 = vadd.f32 %v531_v11, %v264_v5  ;;  %v595_v16 = vpop.f32.mrb[9].mxu1  ;;  %v869_v17 = vpop.f32.mrb[10].mxu0 }
  0xf9   : > { %669 = vst.msk [vmem:[%s1009_s25 + $0x50] sm:$0xff] %vm223_vm0, %v636_v9  ;;  %v650_v19 = vadd.f32 %v595_v16, %v280_v7  ;;  %v637_v20 = vadd.f32 %v869_v17, %v267_v8  ;;  %v885_v21 = vpop.f32.mrb[10].mxu1  ;;  %v534_v22 = vpop.f32.mrb[11].mxu0 }
  0xfa   : > { %685 = vst.msk [vmem:[%s1009_s25 + $0xd0] sm:$0xff] %vm223_vm0, %v652_v14  ;;  %667 = vst.msk [vmem:[%s1009_s25 + $0x40] sm:$0xff] %vm223_vm0, %v634_v15  ;;  %v653_v23 = vadd.f32 %v885_v21, %v283_v12  ;;  %v635_v24 = vadd.f32 %v534_v22, %v265_v13  ;;  %v598_v25 = vpop.f32.mrb[11].mxu1 }
  0xfb   : > { %683 = vst.msk [vmem:[%s1009_s25 + $0xc0] sm:$0xff] %vm223_vm0, %v650_v19  ;;  %670 = vst.msk [vmem:[%s1009_s25 + $0x58] sm:$0xff] %vm223_vm0, %v637_v20  ;;  %v651_v26 = vadd.f32 %v598_v25, %v281_v18 }
  0xfc   : > { %686 = vst.msk [vmem:[%s1009_s25 + $0xd8] sm:$0xff] %vm223_vm0, %v653_v23  ;;  %668 = vst.msk [vmem:[%s1009_s25 + $0x48] sm:$0xff] %vm223_vm0, %v635_v24 }
  0xfd   : > { %684 = vst.msk [vmem:[%s1009_s25 + $0xc8] sm:$0xff] %vm223_vm0, %v651_v26 }
  0xfe   : > { %v872_v30 = vpop.f32.mrb[12].mxu0 }
  0xff   : > { %v640_v33 = vadd.f32 %v872_v30, %v270_v27  ;;  %v888_v34 = vpop.f32.mrb[12].mxu1  ;;  %v547_v35 = vpop.f32.mrb[13].mxu0 }
 0x100   : > { %v656_v38 = vadd.f32 %v888_v34, %v286_v28  ;;  %v638_v39 = vadd.f32 %v547_v35, %v268_v29  ;;  %v611_v40 = vpop.f32.mrb[13].mxu1  ;;  %v873_v41 = vpop.f32.mrb[14].mxu0 }
 0x101   : > { %673 = vst.msk [vmem:[%s1009_s25 + $0x70] sm:$0xff] %vm223_vm0, %v640_v33  ;;  %v654_v43 = vadd.f32 %v611_v40, %v284_v31  ;;  %v641_v44 = vadd.f32 %v873_v41, %v271_v32  ;;  %v889_v45 = vpop.f32.mrb[14].mxu1  ;;  %v550_v46 = vpop.f32.mrb[15].mxu0 }
 0x102   : > { %689 = vst.msk [vmem:[%s1009_s25 + $0xf0] sm:$0xff] %vm223_vm0, %v656_v38  ;;  %671 = vst.msk [vmem:[%s1009_s25 + $0x60] sm:$0xff] %vm223_vm0, %v638_v39  ;;  %v657_v47 = vadd.f32 %v889_v45, %v287_v36  ;;  %v639_v48 = vadd.f32 %v550_v46, %v269_v37  ;;  %v614_v49 = vpop.f32.mrb[15].mxu1 }
 0x103   : > { %687 = vst.msk [vmem:[%s1009_s25 + $0xe0] sm:$0xff] %vm223_vm0, %v654_v43  ;;  %674 = vst.msk [vmem:[%s1009_s25 + $0x78] sm:$0xff] %vm223_vm0, %v641_v44  ;;  %v655_v50 = vadd.f32 %v614_v49, %v285_v42 }
 0x104   : > { %690 = vst.msk [vmem:[%s1009_s25 + $0xf8] sm:$0xff] %vm223_vm0, %v657_v47  ;;  %672 = vst.msk [vmem:[%s1009_s25 + $0x68] sm:$0xff] %vm223_vm0, %v639_v48 }
 0x105   : > { %688 = vst.msk [vmem:[%s1009_s25 + $0xe8] sm:$0xff] %vm223_vm0, %v655_v50 }
 0x106 PF: > { %s12_s11 = sadd.s32 1, %s959_s11   ;;  %s1215_s9 = smov %s955_s10 }
 0x107   : > { %p9_p5 = scmp.ge.s32.totalorder %s12_s11, 4   ;;  %s1216_s10 = smov %s1218_s12 }
 0x109   :  { %11 = sbr.rel (!%p9_p5) target bundleno = 2 (0x2), region = 65 }

</bundles_post_ra>
